<compile_context>
chip_gen: v7x
topology: tpu7x:2x2x1
jax: 0.10.0
libtpu: 0.0.40
codegen_flags: <defaults>
</compile_context>

<pallas_src>
import functools
import math

import jax
import jax.numpy as jnp
import numpy as np
from jax import lax
from jax.experimental import pallas as pl
from jax.experimental.pallas import tpu as pltpu

MAXLEN = 256


# --------------------------------------------------------------- tiled linear
def _linear_kernel(x_ref, w_ref, b_ref, o_ref, acc_ref):
    @pl.when(pl.program_id(2) == 0)
    def _():
        acc_ref[...] = jnp.zeros_like(acc_ref)

    acc_ref[...] += jnp.dot(x_ref[...], w_ref[...],
                            preferred_element_type=jnp.float32)

    @pl.when(pl.program_id(2) == pl.num_programs(2) - 1)
    def _():
        o_ref[...] = (acc_ref[...] + b_ref[...]).astype(o_ref.dtype)


def _pick_k_tile(K, nominal=512):
    """K tile must be a multiple of 128 that divides K exactly (no garbage in the
    reduction), or the full K."""
    if K <= nominal:
        return K
    for t in (512, 384, 256, 128):
        if t <= nominal and K % t == 0:
            return t
    return K  # fallback: single K block


def pallas_linear(x, w, b, *, tm=256, tn=256, tk=512):
    """x: (M, K), w: (K, N), b: (N,) -> (M, N) float32, MXU-tiled & pipelined."""
    x = x.astype(jnp.float32)
    w = w.astype(jnp.float32)
    b = b.astype(jnp.float32).reshape(1, -1)
    M, K = x.shape
    N = w.shape[1]
    tm = min(tm, M)           # small dims -> full-dim blocks (constraint-safe)
    tn = min(tn, N)
    tk = _pick_k_tile(K, tk)
    grid = (pl.cdiv(M, tm), pl.cdiv(N, tn), pl.cdiv(K, tk))
    # TODO(synk): optionally feed bf16 x/w (f32 accumulate) on v6e/v7x for 2x MXU
    # throughput; kept f32 here to preserve the module's numerics.
    return pl.pallas_call(
        _linear_kernel,
        out_shape=jax.ShapeDtypeStruct((M, N), jnp.float32),
        grid=grid,
        in_specs=[
            pl.BlockSpec((tm, tk), lambda i, j, k: (i, k)),
            pl.BlockSpec((tk, tn), lambda i, j, k: (k, j)),
            pl.BlockSpec((1, tn), lambda i, j, k: (0, j)),
        ],
        out_specs=pl.BlockSpec((tm, tn), lambda i, j, k: (i, j)),
        scratch_shapes=[pltpu.VMEM((tm, tn), jnp.float32)],
        compiler_params=pltpu.CompilerParams(
            dimension_semantics=("parallel", "parallel", "arbitrary")),
    )(x, w, b)


# ------------------------------------------------------------------ attention
def _attn_kernel(q_ref, k_ref, v_ref, ra_ref, o_ref, *, num_heads, head_size,
                 q_len, kv_len):
    q = q_ref[0]                       # (T, H) -- already scaled by head_size**-0.5
    k = k_ref[0]                       # (S, H)
    v = v_ref[0]                       # (S, H)
    outs = []
    for h in range(num_heads):         # unrolled: all heads share one grid step
        sl = slice(h * head_size, (h + 1) * head_size)
        qh, kh, vh = q[:, sl], k[:, sl], v[:, sl]
        # Contract last dims directly -- no explicit kh.T / layout copy.
        s = lax.dot_general(qh, kh, (((1,), (1,)), ((), ())),
                            preferred_element_type=jnp.float32)
        s = s + ra_ref[0, h, :q_len, :kv_len]
        m = jnp.max(s, axis=-1, keepdims=True)
        p = jnp.exp(s - m)
        denom = jnp.sum(p, axis=-1, keepdims=True)
        p = p * pl.reciprocal(denom, approx=True)      # EUP, not a vector divide
        outs.append(jnp.dot(p, vh, preferred_element_type=jnp.float32))
    o_ref[0] = jnp.concatenate(outs, axis=-1)          # lane-dense (T, H) store


def pallas_attention(qb, kb, vb, randatt, num_heads):
    """qb: (B, T, H); kb, vb: (B, S, H); randatt: (1, nh, 256, 256) -> (B, T, H)."""
    B, T, H = qb.shape
    S = kb.shape[1]
    hd = H // num_heads
    t_blk = min(MAXLEN, ((T + 7) // 8) * 8)   # second-minor block dim 8-aligned
    kernel = functools.partial(_attn_kernel, num_heads=num_heads, head_size=hd,
                               q_len=T, kv_len=S)
    return pl.pallas_call(
        kernel,
        out_shape=jax.ShapeDtypeStruct((B, T, H), jnp.float32),
        grid=(B,),
        in_specs=[
            pl.BlockSpec((1, T, H), lambda b: (b, 0, 0)),
            pl.BlockSpec((1, S, H), lambda b: (b, 0, 0)),
            pl.BlockSpec((1, S, H), lambda b: (b, 0, 0)),
            # Constant index -> the (nh, t_blk, 256) bias tile is DMA'd only once.
            pl.BlockSpec((1, num_heads, t_blk, MAXLEN), lambda b: (0, 0, 0, 0)),
        ],
        out_specs=pl.BlockSpec((1, T, H), lambda b: (b, 0, 0)),
        compiler_params=pltpu.CompilerParams(dimension_semantics=("parallel",)),
    )(qb, kb, vb, randatt)


# ------------------------------------------------------------ params & forward
def _xavier_uniform(key, shape, gain=1.0):
    # Mirrors torch.nn.init.xavier_uniform_ fan computation.
    if len(shape) == 2:
        fan_out, fan_in = shape
    else:
        rf = int(np.prod(shape[2:])) if len(shape) > 2 else 1
        fan_in = shape[1] * rf
        fan_out = shape[0] * rf
    bound = gain * math.sqrt(6.0 / (fan_in + fan_out))
    return jax.random.uniform(key, shape, jnp.float32, -bound, bound)


def init_params(key, hidden_size, num_heads, q_size=None, k_size=None,
                v_size=None, output_size=None):
    q_size = q_size or hidden_size
    k_size = k_size or hidden_size
    v_size = v_size or hidden_size
    output_size = output_size or hidden_size
    head_size = hidden_size // num_heads
    assert head_size * num_heads == hidden_size

    gain = 1.0
    # NOTE: the module's condition is `q_size == v_size == v_size` (compares
    # v_size to itself); faithfully reproduced here.
    if q_size == v_size == v_size:
        gain = 1.0 / math.sqrt(2.0)

    ks = jax.random.split(key, 8)
    params = {
        # torch Linear weights are (out_features, in_features)
        "randatt": _xavier_uniform(ks[0], (1, num_heads, MAXLEN, MAXLEN), gain),
        "wq": _xavier_uniform(ks[1], (hidden_size, q_size), gain),
        "wk": _xavier_uniform(ks[2], (hidden_size, k_size), gain),
        "wv": _xavier_uniform(ks[3], (hidden_size, v_size), gain),
        "wo": _xavier_uniform(ks[4], (output_size, hidden_size), 1.0),
        # q/k/v biases keep torch default U(-1/sqrt(fan_in), 1/sqrt(fan_in))
        "bq": jax.random.uniform(ks[5], (hidden_size,), jnp.float32,
                                 -1.0 / math.sqrt(q_size), 1.0 / math.sqrt(q_size)),
        "bk": jax.random.uniform(ks[6], (hidden_size,), jnp.float32,
                                 -1.0 / math.sqrt(k_size), 1.0 / math.sqrt(k_size)),
        "bv": jax.random.uniform(ks[7], (hidden_size,), jnp.float32,
                                 -1.0 / math.sqrt(v_size), 1.0 / math.sqrt(v_size)),
        "bo": jnp.zeros((output_size,), jnp.float32),
    }
    return params


def multihead_random_attention(params, q, k, v, num_heads):
    """q: (T, B, d_q), k: (S, B, d_k), v: (S, B, d_v) -> (T, B, output_size)."""
    T, B, _ = q.shape
    S = k.shape[0]
    H = params["wq"].shape[0]
    hd = H // num_heads
    assert T <= MAXLEN and S <= MAXLEN, "randatt only covers sequences up to 256"
    scaling = hd ** (-0.5)

    # Fold the 1/sqrt(head_size) scaling into the q weights/bias (weight-sized op)
    # instead of an extra elementwise HBM pass over the (T*B, H) activation.
    wq = (params["wq"] * scaling).T
    bq = params["bq"] * scaling

    qp = pallas_linear(q.reshape(T * B, -1), wq, bq)                        # (T*B, H)
    kp = pallas_linear(k.reshape(S * B, -1), params["wk"].T, params["bk"])  # (S*B, H)
    vp = pallas_linear(v.reshape(S * B, -1), params["wv"].T, params["bv"])  # (S*B, H)

    # One transpose per projected tensor: (T, B, H) -> (B, T, H).  Head split,
    # randatt slicing and head merge all happen inside the attention kernel.
    qb = qp.reshape(T, B, H).transpose(1, 0, 2)
    kb = kp.reshape(S, B, H).transpose(1, 0, 2)
    vb = vp.reshape(S, B, H).transpose(1, 0, 2)

    ob = pallas_attention(qb, kb, vb, params["randatt"], num_heads)          # (B, T, H)

    o = pallas_linear(ob.reshape(B * T, H), params["wo"].T, params["bo"])    # (B*T, out)

    # TODO(synk): fuse q/k/v projections into one pallas_call when they share an
    # input tensor (self-attention), and fold the (t,b)<->(b,t) reorder into the
    # projection out_spec to drop the remaining glue transposes.
    # TODO(synk): incremental decoding (state K/V concat), mask / avoid_nan and
    # dropout branches are not exercised (mask=None, state=None, training=False).
    return o.reshape(B, T, -1).transpose(1, 0, 2)                            # (T, B, out)


# --------------------------------------------------------------------- reference
def reference_forward(params, q, k, v, num_heads):
    T, B, _ = q.shape
    S = k.shape[0]
    H = params["wq"].shape[0]
    hd = H // num_heads
    scaling = hd ** (-0.5)

    qp = (q.reshape(T * B, -1) @ params["wq"].T + params["bq"]) * scaling
    kp = k.reshape(S * B, -1) @ params["wk"].T + params["bk"]
    vp = v.reshape(S * B, -1) @ params["wv"].T + params["bv"]

    qh = qp.reshape(T, B, num_heads, hd).transpose(1, 2, 0, 3)
    kh = kp.reshape(S, B, num_heads, hd).transpose(1, 2, 0, 3)
    vh = vp.reshape(S, B, num_heads, hd).transpose(1, 2, 0, 3)

    score = jnp.einsum("bhtd,bhsd->bhts", qh, kh)
    score = score + params["randatt"][0, :, :T, :S][None]
    score = jax.nn.softmax(score, axis=-1)
    oh = jnp.einsum("bhts,bhsd->bhtd", score, vh)
    o = oh.transpose(2, 0, 1, 3).reshape(T, B, H)
    o = o.reshape(T * B, H) @ params["wo"].T + params["bo"]
    return o.reshape(T, B, -1)


# -------------------------------------------------------------------------- main
if __name__ == "__main__":
    T, S, B = 16, 16, 2
    hidden_size, num_heads = 64, 4

    key = jax.random.PRNGKey(0)
    kparam, kq, kk, kv = jax.random.split(key, 4)

    params = init_params(kparam, hidden_size, num_heads)
    q = jax.random.normal(kq, (T, B, hidden_size), jnp.float32)
    k = jax.random.normal(kk, (S, B, hidden_size), jnp.float32)
    v = jax.random.normal(kv, (S, B, hidden_size), jnp.float32)

    fwd = jax.jit(multihead_random_attention, static_argnums=(4,))
    out = jax.block_until_ready(fwd(params, q, k, v, num_heads))

    ref = reference_forward(params, q, k, v, num_heads)
    assert out.shape == (T, B, hidden_size), out.shape
    np.testing.assert_allclose(np.asarray(out), np.asarray(ref),
                               rtol=5e-2, atol=5e-2)

    print("KERNEL_OK")
</pallas_src>

<mosaic_0001>
module attributes {stable_mosaic.version = 11 : i64} {
  func.func @_linear_kernel(%arg0: i32, %arg1: i32, %arg2: i32, %arg3: memref<32x64xf32, #tpu.memory_space<vmem>>, %arg4: memref<64x64xf32, #tpu.memory_space<vmem>>, %arg5: memref<1x64xf32, #tpu.memory_space<vmem>>, %arg6: memref<32x64xf32, #tpu.memory_space<vmem>>, %arg7: memref<32x64xf32, #tpu.memory_space<vmem>>) attributes {dimension_semantics = [#tpu.dimension_semantics<parallel>, #tpu.dimension_semantics<parallel>, #tpu.dimension_semantics<arbitrary>], iteration_bounds = array<i64: 1, 1, 1>, scalar_prefetch = 0 : i64, scratch_operands = 1 : i64, tpu.core_type = #tpu.core_type<tc>, window_params = [{transform_indices = @transform_0, window_bounds = array<i64: 32, 64>}, {transform_indices = @transform_1, window_bounds = array<i64: 64, 64>}, {transform_indices = @transform_2, window_bounds = array<i64: 1, 64>}, {transform_indices = @transform_3, window_bounds = array<i64: 32, 64>}]} {
    %c0_i32 = arith.constant 0 : i32
    %0 = arith.cmpi eq, %arg2, %c0_i32 : i32
    %1 = arith.extui %0 : i1 to i32
    %c0_i32_0 = arith.constant 0 : i32
    %2 = arith.cmpi ne, %1, %c0_i32_0 : i32
    scf.if %2 {
      %cst_10 = arith.constant 0.000000e+00 : f32
      %12 = vector.broadcast %cst_10 : f32 to vector<32x64xf32>
      %c0_11 = arith.constant 0 : index
      %c0_12 = arith.constant 0 : index
      %13 = vector.load %arg7[%c0_11, %c0_12] : memref<32x64xf32, #tpu.memory_space<vmem>>, vector<32x64xf32>
      tpu.vector_store %arg7[%c0_11, %c0_12], %12 {strides = array<i32>} : memref<32x64xf32, #tpu.memory_space<vmem>>, vector<32x64xf32>,
    } else {
    }
    %c0 = arith.constant 0 : index
    %c0_1 = arith.constant 0 : index
    %3 = vector.load %arg7[%c0, %c0_1] : memref<32x64xf32, #tpu.memory_space<vmem>>, vector<32x64xf32>
    %c0_2 = arith.constant 0 : index
    %c0_3 = arith.constant 0 : index
    %4 = vector.load %arg3[%c0_2, %c0_3] : memref<32x64xf32, #tpu.memory_space<vmem>>, vector<32x64xf32>
    %c0_4 = arith.constant 0 : index
    %c0_5 = arith.constant 0 : index
    %5 = vector.load %arg4[%c0_4, %c0_5] : memref<64x64xf32, #tpu.memory_space<vmem>>, vector<64x64xf32>
    %cst = arith.constant dense<0.000000e+00> : vector<32x64xf32>
    %6 = tpu.matmul %4, %5, %cst {dimension_numbers = #tpu.dot_dimension_numbers<[1], [0], [0], [1], [0, 0, 1, 1], [], []>} : vector<32x64xf32>, vector<64x64xf32>, vector<32x64xf32> -> vector<32x64xf32>
    %7 = arith.addf %3, %6 : vector<32x64xf32>
    %c0_6 = arith.constant 0 : index
    %c0_7 = arith.constant 0 : index
    %8 = vector.load %arg7[%c0_6, %c0_7] : memref<32x64xf32, #tpu.memory_space<vmem>>, vector<32x64xf32>
    tpu.vector_store %arg7[%c0_6, %c0_7], %7 {strides = array<i32>} : memref<32x64xf32, #tpu.memory_space<vmem>>, vector<32x64xf32>,
    %c0_i32_8 = arith.constant 0 : i32
    %9 = arith.cmpi eq, %arg2, %c0_i32_8 : i32
    %10 = arith.extui %9 : i1 to i32
    %c0_i32_9 = arith.constant 0 : i32
    %11 = arith.cmpi ne, %10, %c0_i32_9 : i32
    scf.if %11 {
      %c0_10 = arith.constant 0 : index
      %c0_11 = arith.constant 0 : index
      %12 = vector.load %arg7[%c0_10, %c0_11] : memref<32x64xf32, #tpu.memory_space<vmem>>, vector<32x64xf32>
      %c0_12 = arith.constant 0 : index
      %c0_13 = arith.constant 0 : index
      %13 = vector.load %arg5[%c0_12, %c0_13] : memref<1x64xf32, #tpu.memory_space<vmem>>, vector<1x64xf32>
      %14 = vector.broadcast %13 : vector<1x64xf32> to vector<32x64xf32>
      %15 = arith.addf %12, %14 : vector<32x64xf32>
      %c0_14 = arith.constant 0 : index
      %c0_15 = arith.constant 0 : index
      %16 = vector.load %arg6[%c0_14, %c0_15] : memref<32x64xf32, #tpu.memory_space<vmem>>, vector<32x64xf32>
      tpu.vector_store %arg6[%c0_14, %c0_15], %15 {strides = array<i32>} : memref<32x64xf32, #tpu.memory_space<vmem>>, vector<32x64xf32>,
    } else {
    }
    return
  }
  func.func @transform_0(%arg0: i32, %arg1: i32, %arg2: i32) -> (i32, i32) {
    %c0_i32 = arith.constant 0 : i32
    return %arg0, %arg2 : i32, i32
  }
  func.func @transform_1(%arg0: i32, %arg1: i32, %arg2: i32) -> (i32, i32) {
    %c0_i32 = arith.constant 0 : i32
    return %arg2, %arg1 : i32, i32
  }
  func.func @transform_2(%arg0: i32, %arg1: i32, %arg2: i32) -> (i32, i32) {
    %c0_i32 = arith.constant 0 : i32
    %c0_i32_0 = arith.constant 0 : i32
    return %c0_i32, %arg1 : i32, i32
  }
  func.func @transform_3(%arg0: i32, %arg1: i32, %arg2: i32) -> (i32, i32) {
    %c0_i32 = arith.constant 0 : i32
    return %arg0, %arg1 : i32, i32
  }
}

module attributes {stable_mosaic.version = 11 : i64} {
  func.func @_attn_kernel(%arg0: i32, %arg1: memref<1x16x64xf32, #tpu.memory_space<vmem>>, %arg2: memref<1x16x64xf32, #tpu.memory_space<vmem>>, %arg3: memref<1x16x64xf32, #tpu.memory_space<vmem>>, %arg4: memref<1x4x16x256xf32, #tpu.memory_space<vmem>>, %arg5: memref<1x16x64xf32, #tpu.memory_space<vmem>>) attributes {dimension_semantics = [#tpu.dimension_semantics<parallel>], iteration_bounds = array<i64: 2>, scalar_prefetch = 0 : i64, scratch_operands = 0 : i64, tpu.core_type = #tpu.core_type<tc>, window_params = [{transform_indices = @transform_0, window_bounds = array<i64: 1, 16, 64>}, {transform_indices = @transform_1, window_bounds = array<i64: 1, 16, 64>}, {transform_indices = @transform_2, window_bounds = array<i64: 1, 16, 64>}, {transform_indices = @transform_3, window_bounds = array<i64: 1, 4, 16, 256>}, {transform_indices = @transform_4, window_bounds = array<i64: 1, 16, 64>}]} {
    %c0 = arith.constant 0 : index
    %c0_0 = arith.constant 0 : index
    %c0_1 = arith.constant 0 : index
    %0 = vector.load %arg1[%c0, %c0_0, %c0_1] : memref<1x16x64xf32, #tpu.memory_space<vmem>>, vector<1x16x64xf32>
    %1 = vector.shape_cast %0 : vector<1x16x64xf32> to vector<16x64xf32>
    %c0_2 = arith.constant 0 : index
    %c0_3 = arith.constant 0 : index
    %c0_4 = arith.constant 0 : index
    %2 = vector.load %arg2[%c0_2, %c0_3, %c0_4] : memref<1x16x64xf32, #tpu.memory_space<vmem>>, vector<1x16x64xf32>
    %3 = vector.shape_cast %2 : vector<1x16x64xf32> to vector<16x64xf32>
    %c0_5 = arith.constant 0 : index
    %c0_6 = arith.constant 0 : index
    %c0_7 = arith.constant 0 : index
    %4 = vector.load %arg3[%c0_5, %c0_6, %c0_7] : memref<1x16x64xf32, #tpu.memory_space<vmem>>, vector<1x16x64xf32>
    %5 = vector.shape_cast %4 : vector<1x16x64xf32> to vector<16x64xf32>
    %6 = vector.extract_strided_slice %1 {offsets = [0, 0], sizes = [16, 16], strides = [1, 1]} : vector<16x64xf32> to vector<16x16xf32>
    %7 = vector.extract_strided_slice %3 {offsets = [0, 0], sizes = [16, 16], strides = [1, 1]} : vector<16x64xf32> to vector<16x16xf32>
    %8 = vector.extract_strided_slice %5 {offsets = [0, 0], sizes = [16, 16], strides = [1, 1]} : vector<16x64xf32> to vector<16x16xf32>
    %cst = arith.constant dense<0.000000e+00> : vector<16x16xf32>
    %9 = tpu.matmul %6, %7, %cst {dimension_numbers = #tpu.dot_dimension_numbers<[1], [1], [0], [0], [0, 0, 1, 0], [], []>} : vector<16x16xf32>, vector<16x16xf32>, vector<16x16xf32> -> vector<16x16xf32>
    %c0_8 = arith.constant 0 : index
    %c0_9 = arith.constant 0 : index
    %c0_10 = arith.constant 0 : index
    %c0_11 = arith.constant 0 : index
    %10 = vector.load %arg4[%c0_8, %c0_9, %c0_10, %c0_11] : memref<1x4x16x256xf32, #tpu.memory_space<vmem>>, vector<1x1x16x16xf32>
    %11 = vector.shape_cast %10 : vector<1x1x16x16xf32> to vector<16x16xf32>
    %12 = arith.addf %9, %11 : vector<16x16xf32>
    %cst_12 = arith.constant dense<0xFF800000> : vector<16xf32>
    %13 = vector.multi_reduction <maximumf>, %12, %cst_12 [1] : vector<16x16xf32> to vector<16xf32>
    %14 = vector.shape_cast %13 : vector<16xf32> to vector<16x1xf32>
    %15 = vector.broadcast %14 : vector<16x1xf32> to vector<16x16xf32>
    %16 = arith.subf %12, %15 : vector<16x16xf32>
    %17 = math.exp %16 : vector<16x16xf32>
    %cst_13 = arith.constant dense<0.000000e+00> : vector<16xf32>
    %18 = vector.multi_reduction <add>, %17, %cst_13 [1] : vector<16x16xf32> to vector<16xf32>
    %19 = vector.shape_cast %18 : vector<16xf32> to vector<16x1xf32>
    %20 = tpu.reciprocal %19 {approx = true} : vector<16x1xf32> -> vector<16x1xf32>
    %21 = vector.broadcast %20 : vector<16x1xf32> to vector<16x16xf32>
    %22 = arith.mulf %17, %21 : vector<16x16xf32>
    %cst_14 = arith.constant dense<0.000000e+00> : vector<16x16xf32>
    %23 = tpu.matmul %22, %8, %cst_14 {dimension_numbers = #tpu.dot_dimension_numbers<[1], [0], [0], [1], [0, 0, 1, 1], [], []>} : vector<16x16xf32>, vector<16x16xf32>, vector<16x16xf32> -> vector<16x16xf32>
    %24 = vector.extract_strided_slice %1 {offsets = [0, 16], sizes = [16, 16], strides = [1, 1]} : vector<16x64xf32> to vector<16x16xf32>
    %25 = vector.extract_strided_slice %3 {offsets = [0, 16], sizes = [16, 16], strides = [1, 1]} : vector<16x64xf32> to vector<16x16xf32>
    %26 = vector.extract_strided_slice %5 {offsets = [0, 16], sizes = [16, 16], strides = [1, 1]} : vector<16x64xf32> to vector<16x16xf32>
    %cst_15 = arith.constant dense<0.000000e+00> : vector<16x16xf32>
    %27 = tpu.matmul %24, %25, %cst_15 {dimension_numbers = #tpu.dot_dimension_numbers<[1], [1], [0], [0], [0, 0, 1, 0], [], []>} : vector<16x16xf32>, vector<16x16xf32>, vector<16x16xf32> -> vector<16x16xf32>
    %c0_16 = arith.constant 0 : index
    %c1 = arith.constant 1 : index
    %c0_17 = arith.constant 0 : index
    %c0_18 = arith.constant 0 : index
    %28 = vector.load %arg4[%c0_16, %c1, %c0_17, %c0_18] : memref<1x4x16x256xf32, #tpu.memory_space<vmem>>, vector<1x1x16x16xf32>
    %29 = vector.shape_cast %28 : vector<1x1x16x16xf32> to vector<16x16xf32>
    %30 = arith.addf %27, %29 : vector<16x16xf32>
    %cst_19 = arith.constant dense<0xFF800000> : vector<16xf32>
    %31 = vector.multi_reduction <maximumf>, %30, %cst_19 [1] : vector<16x16xf32> to vector<16xf32>
    %32 = vector.shape_cast %31 : vector<16xf32> to vector<16x1xf32>
    %33 = vector.broadcast %32 : vector<16x1xf32> to vector<16x16xf32>
    %34 = arith.subf %30, %33 : vector<16x16xf32>
    %35 = math.exp %34 : vector<16x16xf32>
    %cst_20 = arith.constant dense<0.000000e+00> : vector<16xf32>
    %36 = vector.multi_reduction <add>, %35, %cst_20 [1] : vector<16x16xf32> to vector<16xf32>
    %37 = vector.shape_cast %36 : vector<16xf32> to vector<16x1xf32>
    %38 = tpu.reciprocal %37 {approx = true} : vector<16x1xf32> -> vector<16x1xf32>
    %39 = vector.broadcast %38 : vector<16x1xf32> to vector<16x16xf32>
    %40 = arith.mulf %35, %39 : vector<16x16xf32>
    %cst_21 = arith.constant dense<0.000000e+00> : vector<16x16xf32>
    %41 = tpu.matmul %40, %26, %cst_21 {dimension_numbers = #tpu.dot_dimension_numbers<[1], [0], [0], [1], [0, 0, 1, 1], [], []>} : vector<16x16xf32>, vector<16x16xf32>, vector<16x16xf32> -> vector<16x16xf32>
    %42 = vector.extract_strided_slice %1 {offsets = [0, 32], sizes = [16, 16], strides = [1, 1]} : vector<16x64xf32> to vector<16x16xf32>
    %43 = vector.extract_strided_slice %3 {offsets = [0, 32], sizes = [16, 16], strides = [1, 1]} : vector<16x64xf32> to vector<16x16xf32>
    %44 = vector.extract_strided_slice %5 {offsets = [0, 32], sizes = [16, 16], strides = [1, 1]} : vector<16x64xf32> to vector<16x16xf32>
    %cst_22 = arith.constant dense<0.000000e+00> : vector<16x16xf32>
    %45 = tpu.matmul %42, %43, %cst_22 {dimension_numbers = #tpu.dot_dimension_numbers<[1], [1], [0], [0], [0, 0, 1, 0], [], []>} : vector<16x16xf32>, vector<16x16xf32>, vector<16x16xf32> -> vector<16x16xf32>
    %c0_23 = arith.constant 0 : index
    %c2 = arith.constant 2 : index
    %c0_24 = arith.constant 0 : index
    %c0_25 = arith.constant 0 : index
    %46 = vector.load %arg4[%c0_23, %c2, %c0_24, %c0_25] : memref<1x4x16x256xf32, #tpu.memory_space<vmem>>, vector<1x1x16x16xf32>
    %47 = vector.shape_cast %46 : vector<1x1x16x16xf32> to vector<16x16xf32>
    %48 = arith.addf %45, %47 : vector<16x16xf32>
    %cst_26 = arith.constant dense<0xFF800000> : vector<16xf32>
    %49 = vector.multi_reduction <maximumf>, %48, %cst_26 [1] : vector<16x16xf32> to vector<16xf32>
    %50 = vector.shape_cast %49 : vector<16xf32> to vector<16x1xf32>
    %51 = vector.broadcast %50 : vector<16x1xf32> to vector<16x16xf32>
    %52 = arith.subf %48, %51 : vector<16x16xf32>
    %53 = math.exp %52 : vector<16x16xf32>
    %cst_27 = arith.constant dense<0.000000e+00> : vector<16xf32>
    %54 = vector.multi_reduction <add>, %53, %cst_27 [1] : vector<16x16xf32> to vector<16xf32>
    %55 = vector.shape_cast %54 : vector<16xf32> to vector<16x1xf32>
    %56 = tpu.reciprocal %55 {approx = true} : vector<16x1xf32> -> vector<16x1xf32>
    %57 = vector.broadcast %56 : vector<16x1xf32> to vector<16x16xf32>
    %58 = arith.mulf %53, %57 : vector<16x16xf32>
    %cst_28 = arith.constant dense<0.000000e+00> : vector<16x16xf32>
    %59 = tpu.matmul %58, %44, %cst_28 {dimension_numbers = #tpu.dot_dimension_numbers<[1], [0], [0], [1], [0, 0, 1, 1], [], []>} : vector<16x16xf32>, vector<16x16xf32>, vector<16x16xf32> -> vector<16x16xf32>
    %60 = vector.extract_strided_slice %1 {offsets = [0, 48], sizes = [16, 16], strides = [1, 1]} : vector<16x64xf32> to vector<16x16xf32>
    %61 = vector.extract_strided_slice %3 {offsets = [0, 48], sizes = [16, 16], strides = [1, 1]} : vector<16x64xf32> to vector<16x16xf32>
    %62 = vector.extract_strided_slice %5 {offsets = [0, 48], sizes = [16, 16], strides = [1, 1]} : vector<16x64xf32> to vector<16x16xf32>
    %cst_29 = arith.constant dense<0.000000e+00> : vector<16x16xf32>
    %63 = tpu.matmul %60, %61, %cst_29 {dimension_numbers = #tpu.dot_dimension_numbers<[1], [1], [0], [0], [0, 0, 1, 0], [], []>} : vector<16x16xf32>, vector<16x16xf32>, vector<16x16xf32> -> vector<16x16xf32>
    %c0_30 = arith.constant 0 : index
    %c3 = arith.constant 3 : index
    %c0_31 = arith.constant 0 : index
    %c0_32 = arith.constant 0 : index
    %64 = vector.load %arg4[%c0_30, %c3, %c0_31, %c0_32] : memref<1x4x16x256xf32, #tpu.memory_space<vmem>>, vector<1x1x16x16xf32>
    %65 = vector.shape_cast %64 : vector<1x1x16x16xf32> to vector<16x16xf32>
    %66 = arith.addf %63, %65 : vector<16x16xf32>
    %cst_33 = arith.constant dense<0xFF800000> : vector<16xf32>
    %67 = vector.multi_reduction <maximumf>, %66, %cst_33 [1] : vector<16x16xf32> to vector<16xf32>
    %68 = vector.shape_cast %67 : vector<16xf32> to vector<16x1xf32>
    %69 = vector.broadcast %68 : vector<16x1xf32> to vector<16x16xf32>
    %70 = arith.subf %66, %69 : vector<16x16xf32>
    %71 = math.exp %70 : vector<16x16xf32>
    %cst_34 = arith.constant dense<0.000000e+00> : vector<16xf32>
    %72 = vector.multi_reduction <add>, %71, %cst_34 [1] : vector<16x16xf32> to vector<16xf32>
    %73 = vector.shape_cast %72 : vector<16xf32> to vector<16x1xf32>
    %74 = tpu.reciprocal %73 {approx = true} : vector<16x1xf32> -> vector<16x1xf32>
    %75 = vector.broadcast %74 : vector<16x1xf32> to vector<16x16xf32>
    %76 = arith.mulf %71, %75 : vector<16x16xf32>
    %cst_35 = arith.constant dense<0.000000e+00> : vector<16x16xf32>
    %77 = tpu.matmul %76, %62, %cst_35 {dimension_numbers = #tpu.dot_dimension_numbers<[1], [0], [0], [1], [0, 0, 1, 1], [], []>} : vector<16x16xf32>, vector<16x16xf32>, vector<16x16xf32> -> vector<16x16xf32>
    %78 = tpu.concatenate %23, %41, %59, %77 in 1 : vector<16x16xf32>, vector<16x16xf32>, vector<16x16xf32>, vector<16x16xf32> -> vector<16x64xf32>
    %c0_36 = arith.constant 0 : index
    %c0_37 = arith.constant 0 : index
    %c0_38 = arith.constant 0 : index
    %79 = vector.load %arg5[%c0_36, %c0_37, %c0_38] : memref<1x16x64xf32, #tpu.memory_space<vmem>>, vector<1x16x64xf32>
    %80 = vector.shape_cast %79 : vector<1x16x64xf32> to vector<16x64xf32>
    %81 = vector.shape_cast %78 : vector<16x64xf32> to vector<1x16x64xf32>
    tpu.vector_store %arg5[%c0_36, %c0_37, %c0_38], %81 {strides = array<i32>} : memref<1x16x64xf32, #tpu.memory_space<vmem>>, vector<1x16x64xf32>,
    return
  }
  func.func @transform_0(%arg0: i32) -> (i32, i32, i32) {
    %c0_i32 = arith.constant 0 : i32
    %c0_i32_0 = arith.constant 0 : i32
    %c0_i32_1 = arith.constant 0 : i32
    return %arg0, %c0_i32, %c0_i32_0 : i32, i32, i32
  }
  func.func @transform_1(%arg0: i32) -> (i32, i32, i32) {
    %c0_i32 = arith.constant 0 : i32
    %c0_i32_0 = arith.constant 0 : i32
    %c0_i32_1 = arith.constant 0 : i32
    return %arg0, %c0_i32, %c0_i32_0 : i32, i32, i32
  }
  func.func @transform_2(%arg0: i32) -> (i32, i32, i32) {
    %c0_i32 = arith.constant 0 : i32
    %c0_i32_0 = arith.constant 0 : i32
    %c0_i32_1 = arith.constant 0 : i32
    return %arg0, %c0_i32, %c0_i32_0 : i32, i32, i32
  }
  func.func @transform_3(%arg0: i32) -> (i32, i32, i32, i32) {
    %c0_i32 = arith.constant 0 : i32
    %c0_i32_0 = arith.constant 0 : i32
    %c0_i32_1 = arith.constant 0 : i32
    %c0_i32_2 = arith.constant 0 : i32
    %c0_i32_3 = arith.constant 0 : i32
    return %c0_i32, %c0_i32_0, %c0_i32_1, %c0_i32_2 : i32, i32, i32, i32
  }
  func.func @transform_4(%arg0: i32) -> (i32, i32, i32) {
    %c0_i32 = arith.constant 0 : i32
    %c0_i32_0 = arith.constant 0 : i32
    %c0_i32_1 = arith.constant 0 : i32
    return %arg0, %c0_i32, %c0_i32_0 : i32, i32, i32
  }
}

</mosaic_0001>

<bundles_post_ra>
// kernel: multihead_random_attention.5
= control target key start
LH: loop header
LB: loop body
LE: loop exit
PB: predicated region body
PF: predicated region fallthrough
CT: control target
= control target key end

     0   :  { %vm18_vm0 = vcmask 523264   ;;  %v235_v3 = vmov 0.0   ;;  %s323_s1 = inlined_call_operand.vmem [shape: f32[64,64], index: 1, kind: input, shape index: {}]   ;;  %s324_s0 = inlined_call_operand.vmem [shape: f32[32,64], index: 0, kind: input, shape index: {}]   ;;  %s325_s2 = inlined_call_operand.vmem [shape: f32[1,64], index: 2, kind: input, shape index: {}]   ;;  %s326_s3 = inlined_call_operand.vmem [shape: f32[32,64], index: 3, kind: output, shape index: {}]  }
   0x1   :  { %v31_v0 = vld [vmem:[%s323_s1] sm:$0xff]  ;;  %v32_v1 = vld [vmem:[%s323_s1 + $0x8] sm:$0xff]  ;;  %v33_v2 = vld [vmem:[%s323_s1 + $0x10] sm:$0xff]  ;;  %20 = vst.msk [vmem:[#allocation2 + $0x8] sm:$0xff] %vm18_vm0, %v235_v3 }
   0x2   :  { %19 = vst.msk [vmem:[#allocation2] sm:$0xff] %vm18_vm0, %v235_v3  ;;  %21 = vst.msk [vmem:[#allocation2 + $0x10] sm:$0xff] %vm18_vm0, %v235_v3  ;;  %v210_v4 = vpack.c.bf16 %v32_v1, %v31_v0  ;;  %v34_v5 = vld [vmem:[%s323_s1 + $0x18] sm:$0xff]  ;;  %v35_v7 = vld [vmem:[%s323_s1 + $0x20] sm:$0xff] }
   0x3   :  { %22 = vst.msk [vmem:[#allocation2 + $0x18] sm:$0xff] %vm18_vm0, %v235_v3  ;;  %v214_v6 = vpack.c.bf16 %v34_v5, %v33_v2  ;;  %v36_v8 = vld [vmem:[%s323_s1 + $0x28] sm:$0xff]  ;;  %v27_v9 = vld [vmem:[%s324_s0] sm:$0xff]  ;;  %v29_v10 = vld [vmem:[%s324_s0 + $0x10] sm:$0xff] }
   0x4   :  { %211 = vmatprep.subr.bf16.mxu0 %v210_v4  ;;  %226 = vmatprep.subr.bf16.mxu1 %v210_v4  ;;  %v218_v11 = vpack.c.bf16 %v36_v8, %v35_v7  ;;  %v37_v12 = vld [vmem:[%s323_s1 + $0x30] sm:$0xff]  ;;  %v38_v13 = vld [vmem:[%s323_s1 + $0x38] sm:$0xff]  ;;  %v28_v15 = vld [vmem:[%s324_s0 + $0x8] sm:$0xff] }
   0x5   :  { %213 = vmatpush3.bf16.msra.mxu0 %v210_v4  ;;  %230 = vmatpush3.bf16.msra.mxu1 %v210_v4  ;;  %v222_v14 = vpack.c.bf16 %v38_v13, %v37_v12  ;;  %v30_v16 = vld [vmem:[%s324_s0 + $0x18] sm:$0xff]  ;;  %v175_v29 = vld [vmem:[%s325_s2] ss:$0 sm:$0xff] }
   0x6   :  { %215 = vmatprep.subr.bf16.mxu0 %v214_v6  ;;  %227 = vmatprep.subr.bf16.mxu1 %v214_v6 }
   0x7   :  { %204 = vmatprep.mubr.msk.f32.mxu0 %vm18_vm0, %v27_v9  ;;  %207 = vmatprep.mubr.msk.f32.mxu1 %vm18_vm0, %v29_v10 }
   0x8   :  { %v24_v17 = vld [vmem:[#allocation2 + $0x8] sm:$0xff] }
   0x9   :  { %217 = vmatpush3.bf16.msra.mxu0 %v214_v6  ;;  %231 = vmatpush3.bf16.msra.mxu1 %v214_v6  ;;  %v23_v19 = vld [vmem:[#allocation2] sm:$0xff]  ;;  %v25_v20 = vld [vmem:[#allocation2 + $0x10] sm:$0xff] }
   0xa   :  { %219 = vmatprep.subr.bf16.mxu0 %v218_v11  ;;  %228 = vmatprep.subr.bf16.mxu1 %v218_v11  ;;  %v26_v18 = vld [vmem:[#allocation2 + $0x18] sm:$0xff] }
   0xd   :  { %221 = vmatpush3.bf16.msra.mxu0 %v218_v11  ;;  %232 = vmatpush3.bf16.msra.mxu1 %v218_v11 }
   0xe   :  { %223 = vmatprep.subr.bf16.mxu0 %v222_v14  ;;  %229 = vmatprep.subr.bf16.mxu1 %v222_v14 }
  0x11   :  { %225 = vmatpush3.bf16.msra.mxu0 %v222_v14  ;;  %233 = vmatpush3.bf16.msra.mxu1 %v222_v14 }
  0x14   :  { %205 = vmatmul.mubr.msk.f32.vlgmr.msra.gmra.mrb[0].mxu0 %vm18_vm0, %v28_v15  ;;  %208 = vmatmul.mubr.msk.f32.vlgmr.msra.gmra.mrb[0].mxu1 %vm18_vm0, %v30_v16 }
  0xe7   :  { %v206_v21 = vpop.f32.mrb[0].mxu0  ;;  %v209_v22 = vpop.f32.mrb[0].mxu1 }
  0xe8   :  { %v138_v23 = vadd.f32 %v206_v21, %v24_v17  ;;  %v140_v24 = vadd.f32 %v209_v22, %v26_v18  ;;  %v118_v25 = vpop.f32.mrb[1].mxu0  ;;  %v128_v26 = vpop.f32.mrb[1].mxu1 }
  0xe9   :  { %v137_v27 = vadd.f32 %v118_v25, %v23_v19  ;;  %v139_v28 = vadd.f32 %v128_v26, %v25_v20 }
  0xea   :  { %142 = vst.msk [vmem:[#allocation2 + $0x8] sm:$0xff] %vm18_vm0, %v138_v23  ;;  %144 = vst.msk [vmem:[#allocation2 + $0x18] sm:$0xff] %vm18_vm0, %v140_v24 }
  0xeb   :  { %141 = vst.msk [vmem:[#allocation2] sm:$0xff] %vm18_vm0, %v137_v27  ;;  %143 = vst.msk [vmem:[#allocation2 + $0x10] sm:$0xff] %vm18_vm0, %v139_v28 }
  0xf1   :  { %v149_v30 = vld [vmem:[#allocation2 + $0x8] sm:$0xff]  ;;  %v151_v31 = vld [vmem:[#allocation2 + $0x18] sm:$0xff] }
  0xf2   :  { %v160_v32 = vadd.f32 %v175_v29, %v149_v30  ;;  %v162_v33 = vadd.f32 %v175_v29, %v151_v31  ;;  %v148_v34 = vld [vmem:[#allocation2] sm:$0xff]  ;;  %v150_v35 = vld [vmem:[#allocation2 + $0x10] sm:$0xff] }
  0xf3   :  { %v159_v36 = vadd.f32 %v175_v29, %v148_v34  ;;  %v161_v37 = vadd.f32 %v175_v29, %v150_v35 }
  0xf4   :  { %164 = vst.msk [vmem:[%s326_s3 + $0x8] sm:$0xff] %vm18_vm0, %v160_v32  ;;  %166 = vst.msk [vmem:[%s326_s3 + $0x18] sm:$0xff] %vm18_vm0, %v162_v33 }
  0xf5   :  { %163 = vst.msk [vmem:[%s326_s3] sm:$0xff] %vm18_vm0, %v159_v36  ;;  %165 = vst.msk [vmem:[%s326_s3 + $0x10] sm:$0xff] %vm18_vm0, %v161_v37 }

// kernel: multihead_random_attention.8
= control target key start
LH: loop header
LB: loop body
LE: loop exit
PB: predicated region body
PF: predicated region fallthrough
CT: control target
= control target key end

     0   :  { %9 = vsyncpa [#allocation3], 0  ;;  %s1537_s15 = smov 0   ;;  %s1701_s0 = inlined_call_operand.vmem [shape: f32[2,16,64], index: 0, kind: input, shape index: {}]   ;;  %s1702_s1 = inlined_call_operand.vmem [shape: f32[2,16,64], index: 1, kind: input, shape index: {}]   ;;  %s1703_s2 = inlined_call_operand.vmem [shape: f32[2,16,64], index: 2, kind: input, shape index: {}]   ;;  %s1704_s3 = inlined_call_operand.hbm [shape: f32[1,4,256,256], index: 3, kind: input, shape index: {}]   ;;  %s1705_s4 = inlined_call_operand.vmem [shape: f32[2,16,64], index: 4, kind: output, shape index: {}]  }
   0x1 LB: > { %s1543_s16 = sadd.s32 4294967295, %s1496_s15   ;;  %p1216_p0 = scmp.ge.s32.totalorder %s1496_s15, 1  ;;  %s1496_s15 = sphi %s1537_s15, %s15_s15  }
   0x2   : > { %p145_p1 = scmp.lt.s32.totalorder %s1496_s15, 3 }
   0x4   : > { %p1547_p2 = pnand %p1216_p0, %p145_p1 }
   0x5   : > { %p1400_p3 = scmp.eq.s32.totalorder (!%p1547_p2), %s1543_s16, 0 }
   0x6   : > { %149 = sbr.rel (%p1547_p2) target bundleno = 24 (0x18), region = 12 }
   0xd   : > { %s1390_s18 = scalar_select %p1400_p3, [#allocation0], [#allocation6] }
   0xe   : > { %s1498_s20 = smov [#allocation2]   ;;  %s1499_s22 = smov 8192  }
   0xf   : > { %s161_s19 = sld [smem:[%s1390_s18]]   ;;  %s169_s21 = sshll.u32 %s1498_s20, 4  ;;  %s170_s21 = int_to_ptr.vmem [resolvable:$true] %s169_s21 }
  0x10   : > { %1391 = sst [smem:[#allocation5]] (%p1400_p3), %s1499_s22  ;;  %s1500_s23 = smov 512  }
  0x11   : > { %1392 = sst [smem:[#allocation5 + $0x1]] (%p1400_p3), %s1500_s23  ;;  %s1501_s24 = smov 2  }
  0x12   : > { %1393 = sst [smem:[#allocation5 + $0x2]] (%p1400_p3), %s1501_s24  ;;  %s1502_s25 = smov 256  }
  0x13   : > { %1394 = sst [smem:[#allocation5 + $0x3]] (%p1400_p3), %s1502_s25  ;;  %s1503_s28 = smov 16  }
  0x14   : > { %1395 = sst [smem:[#allocation5 + $0x4]] (%p1400_p3), %s1502_s25  ;;  %s1504_s29 = smov [#allocation3]  }
  0x15   : > { %s1218_s26 = sshll.u32 %s161_s19, 26  ;;  %1396 = sst [smem:[#allocation5 + $0x5]] (%p1400_p3), %s1503_s28 }
  0x16   : > { %s1219_s27 = sadd.s32 134217728, %s1218_s26  ;;  %s1505_s30 = smov [#allocation4]  }
  0x17   : > { %1397 = dma.general (%p1400_p3), %s1704_s3, 2048, %s170_s21, %s1504_s29, %s1505_s30, [#allocation5], %s1219_s27, 0  }
  0x18 PF: > { %222 = sbr.rel (%p1547_p2) target bundleno = 2539 (0x9eb), region = 36  ;;  %p1401_p4 = scmp.eq.s32.totalorder (!%p1547_p2), %s1543_s16, 0 }
  0x1f   : > { %1491 = dma.done.wait (%p1401_p4), [#allocation3], 2048  }
  0x20   : > { %1493 = vsyncadd (%p1401_p4), [#allocation3], 4294965248  ;;  %p258_p5 = scmp.lt.s32.totalorder %s1543_s16, 1  ;;  %vm286_vm0 = vcmask 130048   ;;  %s1506_s14 = smov 112   ;;  %v284_v6 = vld [vmem:[#allocation2] sm:$0xff] }
  0x21   : > { %vm1590_vm1 = vmpackc.low %vm286_vm0, %vm286_vm0  ;;  %v285_v8 = vld [vmem:[#allocation2 + $0x10] sm:$0xff]  ;;  %v478_v43 = vld [vmem:[#allocation2 + $0x20] sm:$0xff]  ;;  %s1507_s19 = smov 96   ;;  %s1508_s20 = smov 80   ;;  %vm1114_vm2 = vcmask 261120   ;;  %vm1117_vm3 = vcmask 392192  }
  0x22   : > { %s1710_s16 = smov (!%p258_p5, %s1543_s16), 1  ;;  %v479_v42 = vld [vmem:[#allocation2 + $0x30] sm:$0xff]  ;;  %s1509_s21 = smov 16   ;;  %vm1120_vm4 = vcmask 523264  }
  0x23   : > { %s1578_s7 = sshll.u32 %s1710_s16, 4  ;;  %s1510_s22 = smov 32  }
  0x24   : > { %s267_s10 = scalar_lea.vmem %s1702_s1, %s1578_s7  ;;  %s262_s13 = scalar_lea.vmem %s1701_s0, %s1578_s7 }
  0x25   : > { %v280_v1 = vld [vmem:[%s267_s10] sm:$0xff]  ;;  %v281_v2 = vld [vmem:[%s267_s10 + $0x8] sm:$0xff]  ;;  %s272_s18 = scalar_lea.vmem %s1703_s2, %s1578_s7  ;;  %s1511_s23 = smov 48  }
  0x26   : > { %v1594_v3 = vld [vmem:[%s262_s13] sm:$0xff]  ;;  %v1349_v4 = vpack.c.bf16 %v281_v2, %v280_v1  ;;  %v1602_v5 = vld [vmem:[%s262_s13 + $0x8] sm:$0xff]  ;;  %v1610_v14 = vpack.i.bf16 %v281_v2, %v280_v1  ;;  %s277_s26 = scalar_lea.vmem %s1705_s4, %s1578_s7 }
  0x27   : > { %1297 = vmatprep.mubr.msk.f32.mxu0 %vm286_vm0, %v1594_v3  ;;  %480 = vrot.lane.b32.xlu1 %v1594_v3, %s1506_s14  ;;  %v282_v26 = vld [vmem:[%s272_s18] sm:$0xff]  ;;  %v283_v27 = vld [vmem:[%s272_s18 + $0x8] sm:$0xff] }
  0x28   : > { %1351 = vmatprep.subr.msk.bf16.mxu0 %vm1590_vm1, %v1349_v4  ;;  %v1355_v30 = vpack.c.bf16 %v283_v27, %v282_v26  ;;  %v1636_v50 = vpack.i.bf16 %v283_v27, %v282_v26 }
  0x29   : > { %1354 = vmatpush3.bf16.xpose.msk.msra.mxu0 %vm1590_vm1, %v1349_v4 }
  0x2a   : > { %1356 = vmatprep.subr.bf16.mxu1 %v1355_v30 }
  0x2b   : > { %1358 = vmatpush3.bf16.msra.mxu1 %v1355_v30 }
  0x30   : > { %1298 = vmatmul.mubr.msk.f32.vlgmr.msra.gmra.mrb[0].mxu0 %vm286_vm0, %v1602_v5 }
  0x99   : > { %v481_v32 = vpop.permute.xlu1 %480 }
 0x103   : > { %v1299_v7 = vpop.f32.mrb[0].mxu0 }
 0x104   : > { %v365_v9 = vpop.f32.mrb[1].mxu0  ;;  %v371_v11 = vadd.f32 %v1299_v7, %v285_v8 }
 0x105   : > { %v366_v10 = vadd.f32 %v365_v9, %v284_v6 }
 0x106   : > { %v377_v13 = vsel %vm286_vm0, %v371_v11, -inf }
 0x107   : > { %v374_v12 = vsel %vm286_vm0, %v366_v10, -inf }
 0x108   : > { %375 = vmax.xlane.f32.xlu0 %v374_v12 }
 0x10c   : > { %378 = vmax.xlane.f32.xlu0 %v377_v13 }
 0x122   : > { %1425 = vrot.lane.b32.xlu0 %v1610_v14, %s1506_s14 }
 0x195   : > { %v376_v15 = vpop.xlane.xlu0 %375 }
 0x196   : > { %v380_v16 = vsub.f32 %v366_v10, %v376_v15 }
 0x198   : > { %v382_v19 = vmul.f32 1.442695, %v380_v16 }
 0x199   : > { %v379_v17 = vpop.xlane.xlu0 %378 }
 0x19a   : > { %v381_v18 = vsub.f32 %v371_v11, %v379_v17 }
 0x19c   : > { %v384_v20 = vmul.f32 1.442695, %v381_v18 }
 0x19d   : > { %v1426_v25 = vpop.permute.xlu0 %1425 }
 0x19e   : > { %1454 = vpow2.f32 %v384_v20  ;;  %v1428_v28 = vunpack.i.h.bf16 %v1426_v25  ;;  %v1427_v29 = vunpack.i.l.bf16 %v1426_v25  ;;  %v683_v20 = vld [vmem:[#allocation2 + $0x40] sm:$0xff] }
 0x19f   : > { %1456 = vpow2.f32 %v382_v19  ;;  %v684_v19 = vld [vmem:[#allocation2 + $0x50] sm:$0xff] }
 0x1a0   : > { %v1359_v31 = vpack.c.bf16 %v1428_v28, %v1427_v29 }
 0x1a2   : > { %1361 = vmatprep.subr.msk.bf16.mxu1 %vm1590_vm1, %v1359_v31 }
 0x1a8   : > { %v1455_v21 = vpop.eup %1454 }
 0x1a9   : > { %v389_v22 = vsel %vm286_vm0, %v1455_v21, 0.0  ;;  %v1457_v23 = vpop.eup %1456 }
 0x1aa   : > { %390 = vadd.xlane.f32.xlu1 %v389_v22  ;;  %v386_v24 = vsel %vm286_vm0, %v1457_v23, 0.0 }
 0x1ae   : > { %387 = vadd.xlane.f32.xlu1 %v386_v24 }
 0x1bf   : > { %482 = vrot.lane.b32.xlu1 %v1602_v5, %s1506_s14 }
 0x237   : > { %v391_v33 = vpop.xlane.xlu1 %390 }
 0x238   : > { %1458 = vrcp.f32 %v391_v33 }
 0x23b   : > { %v388_v34 = vpop.xlane.xlu1 %387 }
 0x23c   : > { %1460 = vrcp.f32 %v388_v34 }
 0x23f   : > { %v483_v39 = vpop.permute.xlu1 %482 }
 0x242   : > { %v1459_v35 = vpop.eup %1458 }
 0x243   : > { %v395_v38 = vmul.f32 %v1459_v35, %v1455_v21 }
 0x246   : > { %v1461_v36 = vpop.eup %1460 }
 0x247   : > { %v394_v37 = vmul.f32 %v1461_v36, %v1457_v23 }
 0x249   : > { %1304 = vmatprep.mubr.msk.f32.mxu1 %vm286_vm0, %v394_v37 }
 0x24a   : > { %1305 = vmatmul.mubr.msk.f32.vlgmr.msra.gmra.mrb[0].mxu1 %vm286_vm0, %v395_v38 }
 0x24b   : > { %1364 = vmatpush3.bf16.xpose.msk.msra.mxu1 %vm1590_vm1, %v1359_v31  ;;  %1311 = vmatprep.mubr.msk.f32.mxu1 %vm286_vm0, %v481_v32 }
 0x252   : > { %1312 = vmatmul.mubr.msk.f32.vlgmr.msra.gmra.mrb[2].mxu1 %vm286_vm0, %v483_v39 }
 0x31d   : > { %v1630_v40 = vpop.f32.mrb[0].mxu1 }
 0x31e   : > { %v1632_v41 = vpop.f32.mrb[1].mxu1 }
 0x325   : > { %v1313_v44 = vpop.f32.mrb[2].mxu1 }
 0x326   : > { %v568_v45 = vadd.f32 %v1313_v44, %v479_v42  ;;  %v562_v46 = vpop.f32.mrb[3].mxu1 }
 0x327   : > { %v563_v47 = vadd.f32 %v562_v46, %v478_v43 }
 0x328   : > { %v574_v48 = vsel %vm286_vm0, %v568_v45, -inf }
 0x329   : > { %575 = vmax.xlane.f32.xlu0 %v574_v48  ;;  %v571_v49 = vsel %vm286_vm0, %v563_v47, -inf }
 0x32a   : > { %572 = vmax.xlane.f32.xlu1 %v571_v49 }
 0x33b   : > { %1430 = vrot.lane.b32.xlu1 %v1636_v50, %s1506_s14 }
 0x33f   : > { %685 = vrot.lane.b32.xlu1 %v1594_v3, %s1507_s19 }
 0x343   : > { %687 = vrot.lane.b32.xlu1 %v1602_v5, %s1507_s19 }
 0x3b6   : > { %v576_v51 = vpop.xlane.xlu0 %575 }
 0x3b7   : > { %v578_v52 = vsub.f32 %v568_v45, %v576_v51  ;;  %v573_v53 = vpop.xlane.xlu1 %572 }
 0x3b8   : > { %v577_v54 = vsub.f32 %v563_v47, %v573_v53 }
 0x3b9   : > { %v581_v55 = vmul.f32 1.442695, %v578_v52 }
 0x3ba   : > { %v579_v56 = vmul.f32 1.442695, %v577_v54 }
 0x3bb   : > { %1462 = vpow2.f32 %v581_v55  ;;  %v1431_v61 = vpop.permute.xlu1 %1430  ;;  %v887_v55 = vld [vmem:[#allocation2 + $0x70] sm:$0xff] }
 0x3bc   : > { %1464 = vpow2.f32 %v579_v56  ;;  %v1433_v62 = vunpack.i.h.bf16 %v1431_v61  ;;  %v1432_v63 = vunpack.i.l.bf16 %v1431_v61  ;;  %v886_v56 = vld [vmem:[#allocation2 + $0x60] sm:$0xff] }
 0x3be   : > { %v1365_v1 = vpack.c.bf16 %v1433_v62, %v1432_v63 }
 0x3bf   : > { %v686_v15 = vpop.permute.xlu1 %685 }
 0x3c0   : > { %1366 = vmatprep.subr.bf16.mxu0 %v1365_v1 }
 0x3c1   : > { %1368 = vmatpush3.bf16.msra.mxu0 %v1365_v1 }
 0x3c3   : > { %v688_v16 = vpop.permute.xlu1 %687 }
 0x3c5   : > { %v1463_v57 = vpop.eup %1462 }
 0x3c6   : > { %v586_v58 = vsel %vm286_vm0, %v1463_v57, 0.0  ;;  %v1465_v59 = vpop.eup %1464 }
 0x3c7   : > { %587 = vadd.xlane.f32.xlu0 %v586_v58  ;;  %v583_v60 = vsel %vm286_vm0, %v1465_v59, 0.0 }
 0x3cb   : > { %584 = vadd.xlane.f32.xlu0 %v583_v60 }
 0x3e1   : > { %1435 = vrot.lane.b32.xlu0 %v1610_v14, %s1507_s19 }
 0x454   : > { %v588_v2 = vpop.xlane.xlu0 %587 }
 0x455   : > { %1466 = vrcp.f32 %v588_v2 }
 0x458   : > { %v585_v4 = vpop.xlane.xlu0 %584 }
 0x459   : > { %1468 = vrcp.f32 %v585_v4 }
 0x45c   : > { %v1436_v6 = vpop.permute.xlu0 %1435 }
 0x45d   : > { %v1438_v7 = vunpack.i.h.bf16 %v1436_v6  ;;  %v1437_v8 = vunpack.i.l.bf16 %v1436_v6 }
 0x45f   : > { %v1369_v9 = vpack.c.bf16 %v1438_v7, %v1437_v8  ;;  %v1467_v10 = vpop.eup %1466 }
 0x460   : > { %v592_v13 = vmul.f32 %v1467_v10, %v1463_v57 }
 0x461   : > { %1371 = vmatprep.subr.msk.bf16.mxu0 %vm1590_vm1, %v1369_v9 }
 0x463   : > { %v1469_v11 = vpop.eup %1468 }
 0x464   : > { %v591_v12 = vmul.f32 %v1469_v11, %v1465_v59 }
 0x466   : > { %1318 = vmatprep.mubr.msk.f32.mxu0 %vm286_vm0, %v591_v12 }
 0x467   : > { %1319 = vmatmul.mubr.msk.f32.vlgmr.msra.gmra.mrb[2].mxu0 %vm286_vm0, %v592_v13 }
 0x468   : > { %1374 = vmatpush3.bf16.xpose.msk.msra.mxu0 %vm1590_vm1, %v1369_v9  ;;  %1325 = vmatprep.mubr.msk.f32.mxu0 %vm286_vm0, %v686_v15 }
 0x46f   : > { %1326 = vmatmul.mubr.msk.f32.vlgmr.msra.gmra.mrb[4].mxu0 %vm286_vm0, %v688_v16 }
 0x53a   : > { %v1656_v17 = vpop.f32.mrb[2].mxu0 }
 0x53b   : > { %v1658_v18 = vpop.f32.mrb[3].mxu0 }
 0x542   : > { %v1327_v21 = vpop.f32.mrb[4].mxu0 }
 0x543   : > { %v773_v22 = vadd.f32 %v1327_v21, %v684_v19  ;;  %v767_v23 = vpop.f32.mrb[5].mxu0 }
 0x544   : > { %v768_v24 = vadd.f32 %v767_v23, %v683_v20 }
 0x545   : > { %v779_v25 = vsel %vm286_vm0, %v773_v22, -inf }
 0x546   : > { %780 = vmax.xlane.f32.xlu0 %v779_v25  ;;  %v776_v26 = vsel %vm286_vm0, %v768_v24, -inf }
 0x547   : > { %777 = vmax.xlane.f32.xlu1 %v776_v26 }
 0x558   : > { %1440 = vrot.lane.b32.xlu1 %v1636_v50, %s1507_s19 }
 0x55c   : > { %888 = vrot.lane.b32.xlu1 %v1594_v3, %s1508_s20 }
 0x560   : > { %890 = vrot.lane.b32.xlu1 %v1602_v5, %s1508_s20 }
 0x5d3   : > { %v781_v27 = vpop.xlane.xlu0 %780 }
 0x5d4   : > { %v783_v28 = vsub.f32 %v773_v22, %v781_v27  ;;  %v778_v29 = vpop.xlane.xlu1 %777 }
 0x5d5   : > { %v782_v30 = vsub.f32 %v768_v24, %v778_v29 }
 0x5d6   : > { %v786_v31 = vmul.f32 1.442695, %v783_v28 }
 0x5d7   : > { %v784_v32 = vmul.f32 1.442695, %v782_v30 }
 0x5d8   : > { %1470 = vpow2.f32 %v786_v31  ;;  %v1441_v3 = vpop.permute.xlu1 %1440 }
 0x5d9   : > { %1472 = vpow2.f32 %v784_v32  ;;  %v1443_v37 = vunpack.i.h.bf16 %v1441_v3  ;;  %v1442_v38 = vunpack.i.l.bf16 %v1441_v3 }
 0x5db   : > { %v1375_v5 = vpack.c.bf16 %v1443_v37, %v1442_v38 }
 0x5dc   : > { %v889_v52 = vpop.permute.xlu1 %888 }
 0x5dd   : > { %1376 = vmatprep.subr.bf16.mxu1 %v1375_v5 }
 0x5de   : > { %1378 = vmatpush3.bf16.msra.mxu1 %v1375_v5 }
 0x5e2   : > { %v1471_v33 = vpop.eup %1470 }
 0x5e3   : > { %v791_v34 = vsel %vm286_vm0, %v1471_v33, 0.0  ;;  %v1473_v35 = vpop.eup %1472 }
 0x5e4   : > { %792 = vadd.xlane.f32.xlu0 %v791_v34  ;;  %v788_v36 = vsel %vm286_vm0, %v1473_v35, 0.0 }
 0x5e8   : > { %789 = vadd.xlane.f32.xlu0 %v788_v36 }
 0x5fe   : > { %1445 = vrot.lane.b32.xlu0 %v1610_v14, %s1508_s20  ;;  %v891_v14 = vpop.permute.xlu1 %890 }
 0x671   : > { %v793_v39 = vpop.xlane.xlu0 %792 }
 0x672   : > { %1474 = vrcp.f32 %v793_v39 }
 0x675   : > { %v790_v42 = vpop.xlane.xlu0 %789 }
 0x676   : > { %1476 = vrcp.f32 %v790_v42 }
 0x679   : > { %v1446_v43 = vpop.permute.xlu0 %1445 }
 0x67a   : > { %v1448_v44 = vunpack.i.h.bf16 %v1446_v43  ;;  %v1447_v45 = vunpack.i.l.bf16 %v1446_v43 }
 0x67c   : > { %v1379_v46 = vpack.c.bf16 %v1448_v44, %v1447_v45  ;;  %v1475_v47 = vpop.eup %1474 }
 0x67d   : > { %v797_v51 = vmul.f32 %v1475_v47, %v1471_v33 }
 0x67e   : > { %1381 = vmatprep.subr.msk.bf16.mxu1 %vm1590_vm1, %v1379_v46 }
 0x680   : > { %v1477_v48 = vpop.eup %1476 }
 0x681   : > { %v796_v49 = vmul.f32 %v1477_v48, %v1473_v35 }
 0x683   : > { %1332 = vmatprep.mubr.msk.f32.mxu1 %vm286_vm0, %v796_v49 }
 0x684   : > { %1333 = vmatmul.mubr.msk.f32.vlgmr.msra.gmra.mrb[4].mxu1 %vm286_vm0, %v797_v51 }
 0x685   : > { %1384 = vmatpush3.bf16.xpose.msk.msra.mxu1 %vm1590_vm1, %v1379_v46  ;;  %1339 = vmatprep.mubr.msk.f32.mxu1 %vm286_vm0, %v889_v52 }
 0x68c   : > { %1340 = vmatmul.mubr.msk.f32.vlgmr.msra.gmra.mrb[6].mxu1 %vm286_vm0, %v891_v14 }
 0x757   : > { %v1334_v53 = vpop.f32.mrb[4].mxu1 }
 0x758   : > { %v876_v54 = vpop.f32.mrb[5].mxu1 }
 0x75f   : > { %v1341_v57 = vpop.f32.mrb[6].mxu1 }
 0x760   : > { %v976_v58 = vadd.f32 %v1341_v57, %v887_v55  ;;  %v970_v59 = vpop.f32.mrb[7].mxu1 }
 0x761   : > { %v971_v60 = vadd.f32 %v970_v59, %v886_v56 }
 0x762   : > { %v982_v61 = vsel %vm286_vm0, %v976_v58, -inf }
 0x763   : > { %983 = vmax.xlane.f32.xlu0 %v982_v61  ;;  %v979_v62 = vsel %vm286_vm0, %v971_v60, -inf }
 0x764   : > { %980 = vmax.xlane.f32.xlu1 %v979_v62 }
 0x775   : > { %1450 = vrot.lane.b32.xlu1 %v1636_v50, %s1508_s20 }
 0x779   : > { %1092 = vrot.lane.b32.xlu1 %v1656_v17, %s1509_s21 }
 0x77d   : > { %1098 = vrot.lane.b32.xlu1 %v876_v54, %s1510_s22 }
 0x781   : > { %1100 = vrot.lane.b32.xlu1 %v1334_v53, %s1510_s22 }
 0x7f0   : > { %v984_v0 = vpop.xlane.xlu0 %983 }
 0x7f1   : > { %v986_v63 = vsub.f32 %v976_v58, %v984_v0  ;;  %v981_v1 = vpop.xlane.xlu1 %980 }
 0x7f2   : > { %v985_v2 = vsub.f32 %v971_v60, %v981_v1 }
 0x7f3   : > { %v989_v4 = vmul.f32 1.442695, %v986_v63 }
 0x7f4   : > { %v987_v6 = vmul.f32 1.442695, %v985_v2 }
 0x7f5   : > { %v1451_v7 = vpop.permute.xlu1 %1450 }
 0x7f6   : > { %1478 = vpow2.f32 %v987_v6  ;;  %v1453_v8 = vunpack.i.h.bf16 %v1451_v7  ;;  %v1452_v9 = vunpack.i.l.bf16 %v1451_v7 }
 0x7f7   : > { %1480 = vpow2.f32 %v989_v4 }
 0x7f8   : > { %v1385_v10 = vpack.c.bf16 %v1453_v8, %v1452_v9 }
 0x7f9   : > { %v1093_v24 = vpop.permute.xlu1 %1092 }
 0x7fa   : > { %1386 = vmatprep.subr.bf16.mxu0 %v1385_v10  ;;  %v1113_v28 = vsel %vm286_vm0, %v1630_v40, %v1093_v24 }
 0x7fb   : > { %1388 = vmatpush3.bf16.msra.mxu0 %v1385_v10 }
 0x800   : > { %v1479_v50 = vpop.eup %1478 }
 0x801   : > { %v991_v11 = vsel %vm286_vm0, %v1479_v50, 0.0  ;;  %v1481_v12 = vpop.eup %1480 }
 0x802   : > { %992 = vadd.xlane.f32.xlu0 %v991_v11  ;;  %v994_v13 = vsel %vm286_vm0, %v1481_v12, 0.0 }
 0x806   : > { %995 = vadd.xlane.f32.xlu0 %v994_v13 }
 0x81c   : > { %1090 = vrot.lane.b32.xlu0 %v1658_v18, %s1509_s21  ;;  %v1099_v18 = vpop.permute.xlu1 %1098 }
 0x820   : > { %v1101_v26 = vpop.permute.xlu1 %1100 }
 0x821   : > { %v1116_v29 = vsel %vm1114_vm2, %v1113_v28, %v1101_v26 }
 0x88f   : > { %v993_v15 = vpop.xlane.xlu0 %992 }
 0x890   : > { %1482 = vrcp.f32 %v993_v15 }
 0x893   : > { %v996_v16 = vpop.xlane.xlu0 %995 }
 0x894   : > { %1484 = vrcp.f32 %v996_v16 }
 0x897   : > { %v1091_v25 = vpop.permute.xlu0 %1090 }
 0x898   : > { %v1112_v27 = vsel %vm286_vm0, %v1632_v41, %v1091_v25 }
 0x899   : > { %v1115_v32 = vsel %vm1114_vm2, %v1112_v27, %v1099_v18 }
 0x89a   : > { %v1483_v17 = vpop.eup %1482 }
 0x89b   : > { %v999_v19 = vmul.f32 %v1483_v17, %v1479_v50 }
 0x89d   : > { %1346 = vmatprep.mubr.msk.f32.mxu0 %vm286_vm0, %v999_v19 }
 0x89e   : > { %v1485_v20 = vpop.eup %1484 }
 0x89f   : > { %v1000_v21 = vmul.f32 %v1485_v20, %v1481_v12 }
 0x8a1   : > { %1347 = vmatmul.mubr.msk.f32.vlgmr.msra.gmra.mrb[6].mxu0 %vm286_vm0, %v1000_v21 }
 0x974   : > { %v1348_v22 = vpop.f32.mrb[6].mxu0 }
 0x975   : > { %1108 = vrot.lane.b32.xlu1 %v1348_v22, %s1511_s23  ;;  %v1079_v23 = vpop.f32.mrb[7].mxu0 }
 0x976   : > { %1106 = vrot.lane.b32.xlu0 %v1079_v23, %s1511_s23 }
 0x9e7   : > { %v1109_v30 = vpop.permute.xlu1 %1108 }
 0x9e8   : > { %v1119_v31 = vsel %vm1117_vm3, %v1116_v29, %v1109_v30  ;;  %v1107_v33 = vpop.permute.xlu0 %1106 }
 0x9e9   : > { %1122 = vst.msk [vmem:[%s277_s26 + $0x8] sm:$0xff] %vm1120_vm4, %v1119_v31  ;;  %v1118_v34 = vsel %vm1117_vm3, %v1115_v32, %v1107_v33 }
 0x9ea   : > { %1121 = vst.msk [vmem:[%s277_s26] sm:$0xff] %vm1120_vm4, %v1118_v34 }
 0x9eb PF: > { %s15_s15 = sadd.s32 1, %s1496_s15  }
 0x9ec   : > { %p12_p6 = scmp.ge.s32.totalorder %s15_s15, 4  }
 0x9ee   :  { %14 = sbr.rel (!%p12_p6) target bundleno = 1 (0x1), region = 85 }
 0x9f5   :  { %1144 = vsyncpa [#allocation3], 1 }
 0x9f6   :  { %1146 = vsyncpa [#allocation3 + $0x1], 1 }

</bundles_post_ra>
